<compile_context>
chip_gen: v7x
topology: tpu7x:2x2x1
jax: 0.10.0
libtpu: 0.0.40
codegen_flags: <defaults>
</compile_context>

<pallas_src>
import jax
import jax.numpy as jnp
from jax.experimental import pallas as pl
from jax.experimental.pallas import tpu as pltpu

_MIB = 1024 * 1024


def _round_up(x, m):
    return ((x + m - 1) // m) * m


def _cdiv(a, b):
    return (a + b - 1) // b


def _sublane_granule(dtype):
    # Sub-32-bit dtypes pack along sublanes: 16 rows/vreg for bf16, 32 for i8.
    return {4: 8, 2: 16, 1: 32}.get(jnp.dtype(dtype).itemsize, 8)


def _tpu_config():
    """Returns (vmem_capacity_bytes, num_tensorcores) with safe fallbacks."""
    vmem_cap = 64 * _MIB      # conservative default (v7x per-TC VMEM)
    num_cores = 0
    try:
        info = pltpu.get_tpu_info()
        vmem_cap = int(getattr(info, "vmem_capacity_bytes", vmem_cap))
        num_cores = int(getattr(info, "num_tensorcores", 0) or 0)
    except Exception:
        pass  # off-TPU tracing / older jax: keep conservative defaults
    if num_cores <= 0:
        # Heuristic: 64 MiB/TC parts (v7x) have 2 TensorCores per chip;
        # 128 MiB parts (v5e / v6e) have 1.
        num_cores = 2 if vmem_cap <= 64 * _MIB else 1
    return vmem_cap, num_cores


def _padded_dim(d, align=128):
    """Pad a feature dim to a lane-dense multiple of 128 only when cheap."""
    if d % align == 0:
        return d
    padded = _round_up(d, align)
    # Small dims (e.g. 32) stay unpadded: block_shape may equal the full array
    # dim, and padding would inflate h/out HBM traffic up to 4x.
    return padded if padded <= int(d * 1.25) else d


def _pad2(x, rows, cols):
    pr, pc = rows - x.shape[0], cols - x.shape[1]
    if pr or pc:
        x = jnp.pad(x, ((0, pr), (0, pc)))
    return x


def _apply_node_func_kernel(h_ref, w1_ref, b1_ref, w2_ref, b2_ref, o_ref):
    # First linear: native-dtype operands on the MXU, f32 accumulation.
    z = jnp.dot(h_ref[...], w1_ref[...], preferred_element_type=jnp.float32)
    z = z + b1_ref[...].astype(jnp.float32)
    z = jnp.maximum(z, 0.0)                       # ReLU epilogue in f32 (VPU)
    # Second linear: cast activation to the weight dtype so bf16 weights get a
    # bf16-native MXU pass on v6e/v7x; accumulate in f32.
    # TODO(synk): for very large d_hid (>= 2048) with tile_n ~1024, chunk the
    # hidden dim so the full f32 intermediate z is never live at once.
    z = z.astype(w2_ref.dtype)
    o = jnp.dot(z, w2_ref[...], preferred_element_type=jnp.float32)
    o = o + b2_ref[...].astype(jnp.float32)
    o_ref[...] = o.astype(o_ref.dtype)


def _pick_tile_n(n_nodes, d_in_p, d_hid_p, d_out_p, act_bytes, param_bytes,
                 budget_bytes, granule, num_cores, max_tile=1024):
    """Largest node tile (multiple of `granule`, <= max_tile) fitting the VMEM budget."""
    # Resident, single-buffered weights + biases (constant index_map => 1 buffer).
    weight_bytes = (d_in_p * d_hid_p + d_hid_p * d_out_p
                    + d_hid_p + d_out_p) * param_bytes
    if weight_bytes > budget_bytes:
        # TODO(synk): tile the contraction (K) dims instead of failing when the
        # weights alone exceed the VMEM budget.
        raise ValueError(
            f"MLP weights need {weight_bytes} B of VMEM, exceeding the tiling "
            f"budget of {budget_bytes} B; K-tiling not implemented.")
    # Per-node-row bytes: double-buffered h tile + out tile, plus f32 intermediates.
    per_row = (2 * d_in_p * act_bytes        # h tile (x2 buffers)
               + 2 * d_out_p * act_bytes     # out tile (x2 buffers)
               + d_hid_p * 4                 # f32 hidden activation
               + d_out_p * 4)                # f32 accumulator
    avail = max(budget_bytes - weight_bytes, granule * per_row)
    tile = int(min(max_tile, avail // per_row))
    tile = max(granule, (tile // granule) * granule)
    if tile >= 128:                          # full-tile M granularity when large
        tile = (tile // 128) * 128
    n_rounded = _round_up(n_nodes, granule)
    tile = min(tile, n_rounded)
    # Multi-TensorCore chips (v7x): keep an even number of grid steps >= 2 so
    # the "parallel" axis splits evenly across cores.  Single-TC chips (v5e,
    # v6e) keep one maximal tile: splitting only adds per-step overhead.
    if num_cores >= 2 and n_rounded > granule:
        steps = max(2, _round_up(_cdiv(n_rounded, tile), 2))
        tile = max(granule, _round_up(_cdiv(n_rounded, steps), granule))
    return tile


def apply_node_func(h, w1, b1, w2, b2, *, tile_n=None, single_buffer_weights=True):
    """Pallas implementation of ApplyNodeFunc.forward(h) = mlp(h)."""
    N, d_in = h.shape
    d_in_w, d_hid = w1.shape
    d_hid_w, d_out = w2.shape
    assert d_in == d_in_w and d_hid == d_hid_w

    b1 = b1.reshape(1, d_hid)
    b2 = b2.reshape(1, d_out)

    vmem_cap, num_cores = _tpu_config()
    budget_bytes = vmem_cap // 2             # 32 MiB on v7x, 64 MiB on v5e/v6e
    vmem_limit_bytes = (vmem_cap * 3) // 4   # 48 MiB on v7x, 96 MiB on v5e/v6e

    # Lane-dense feature dims only when padding is cheap; zero padding keeps
    # the math exact (padded W rows/cols and bias entries are zero).
    d_in_p = _padded_dim(d_in)
    d_hid_p = _padded_dim(d_hid)
    d_out_p = _padded_dim(d_out)

    act_bytes = jnp.dtype(h.dtype).itemsize
    param_bytes = jnp.dtype(w1.dtype).itemsize
    granule = _sublane_granule(h.dtype)

    if tile_n is None:
        tile_n = _pick_tile_n(N, d_in_p, d_hid_p, d_out_p, act_bytes, param_bytes,
                              budget_bytes, granule, num_cores)
    tile_n = max(granule, (int(tile_n) // granule) * granule)

    n_pad = _round_up(N, tile_n)

    # Pads are skipped entirely when dims are already aligned (zero-cost path).
    # For repeated forwards, pre-pad the weights/biases once outside this call.
    h_p = _pad2(h, n_pad, d_in_p)
    w1_p = _pad2(w1, d_in_p, d_hid_p)
    b1_p = _pad2(b1, 1, d_hid_p)
    w2_p = _pad2(w2, d_hid_p, d_out_p)
    b2_p = _pad2(b2, 1, d_out_p)

    grid = (n_pad // tile_n,)

    def build(resident_mode):
        return pl.pallas_call(
            _apply_node_func_kernel,
            out_shape=jax.ShapeDtypeStruct((n_pad, d_out_p), h.dtype),
            grid_spec=pltpu.PrefetchScalarGridSpec(
                num_scalar_prefetch=0,
                grid=grid,
                in_specs=[
                    # Streamed node tile (double-buffered by default).
                    pl.BlockSpec((tile_n, d_in_p), lambda i: (i, 0)),
                    # Resident weights/biases: constant index map, 1 buffer.
                    pl.BlockSpec((d_in_p, d_hid_p), lambda i: (0, 0),
                                 pipeline_mode=resident_mode),
                    pl.BlockSpec((1, d_hid_p), lambda i: (0, 0),
                                 pipeline_mode=resident_mode),
                    pl.BlockSpec((d_hid_p, d_out_p), lambda i: (0, 0),
                                 pipeline_mode=resident_mode),
                    pl.BlockSpec((1, d_out_p), lambda i: (0, 0),
                                 pipeline_mode=resident_mode),
                ],
                out_specs=pl.BlockSpec((tile_n, d_out_p), lambda i: (i, 0)),
            ),
            compiler_params=pltpu.CompilerParams(
                dimension_semantics=("parallel",),
                vmem_limit_bytes=int(vmem_limit_bytes),
            ),
        )

    resident_mode = pl.Buffered(buffer_count=1) if single_buffer_weights else None
    try:
        out_p = build(resident_mode)(h_p, w1_p, b1_p, w2_p, b2_p)
    except Exception:
        if not single_buffer_weights:
            raise
        # Fallback: retry with default (double-buffered) specs if this jax
        # version rejects single-buffered resident inputs.
        out_p = build(None)(h_p, w1_p, b1_p, w2_p, b2_p)

    # Slice off node / feature padding only when padding was applied.
    if n_pad != N or d_out_p != d_out:
        out_p = out_p[:N, :d_out]
    return out_p


def reference_mlp(h, w1, b1, w2, b2):
    z = jnp.maximum(h @ w1 + b1.reshape(1, -1), 0.0)
    return z @ w2 + b2.reshape(1, -1)


if __name__ == "__main__":
    key = jax.random.PRNGKey(0)
    k_h, k_w1, k_b1, k_w2, k_b2, k_h2 = jax.random.split(key, 6)

    # Small, module-consistent shapes: 8 graph nodes, 32-dim features/hidden/out.
    N, D_IN, D_HID, D_OUT = 8, 32, 32, 32

    h = jax.random.normal(k_h, (N, D_IN), dtype=jnp.float32)
    w1 = jax.random.normal(k_w1, (D_IN, D_HID), dtype=jnp.float32) * (1.0 / jnp.sqrt(D_IN))
    b1 = jax.random.normal(k_b1, (1, D_HID), dtype=jnp.float32) * 0.01
    w2 = jax.random.normal(k_w2, (D_HID, D_OUT), dtype=jnp.float32) * (1.0 / jnp.sqrt(D_HID))
    b2 = jax.random.normal(k_b2, (1, D_OUT), dtype=jnp.float32) * 0.01

    out = jax.block_until_ready(apply_node_func(h, w1, b1, w2, b2))
    ref = reference_mlp(h, w1, b1, w2, b2)
    assert out.shape == (N, D_OUT)
    assert jnp.allclose(out, ref, atol=1e-5, rtol=1e-5), "mismatch vs JAX reference"

    # Ragged node count (not a multiple of the tile) exercises the pad/slice
    # path and, on multi-TC chips, the even-grid-step sizing.
    N2 = 20
    h2 = jax.random.normal(k_h2, (N2, D_IN), dtype=jnp.float32)
    out2 = jax.block_until_ready(apply_node_func(h2, w1, b1, w2, b2))
    ref2 = reference_mlp(h2, w1, b1, w2, b2)
    assert out2.shape == (N2, D_OUT)
    assert jnp.allclose(out2, ref2, atol=1e-5, rtol=1e-5), "mismatch (ragged N)"

    print("KERNEL_OK")
</pallas_src>

<mosaic_0001>
module attributes {stable_mosaic.version = 11 : i64} {
  func.func @_apply_node_func_kernel(%arg0: i32, %arg1: memref<8x32xf32, #tpu.memory_space<vmem>>, %arg2: memref<32x32xf32, #tpu.memory_space<vmem>>, %arg3: memref<1x32xf32, #tpu.memory_space<vmem>>, %arg4: memref<32x32xf32, #tpu.memory_space<vmem>>, %arg5: memref<1x32xf32, #tpu.memory_space<vmem>>, %arg6: memref<8x32xf32, #tpu.memory_space<vmem>>) attributes {dimension_semantics = [#tpu.dimension_semantics<parallel>], iteration_bounds = array<i64: 1>, scalar_prefetch = 0 : i64, scratch_operands = 0 : i64, tpu.core_type = #tpu.core_type<tc>, window_params = [{transform_indices = @transform_0, window_bounds = array<i64: 8, 32>}, {pipeline_mode = #tpu.pipeline_mode<synchronous>, transform_indices = @transform_1, window_bounds = array<i64: 32, 32>}, {pipeline_mode = #tpu.pipeline_mode<synchronous>, transform_indices = @transform_2, window_bounds = array<i64: 1, 32>}, {pipeline_mode = #tpu.pipeline_mode<synchronous>, transform_indices = @transform_3, window_bounds = array<i64: 32, 32>}, {pipeline_mode = #tpu.pipeline_mode<synchronous>, transform_indices = @transform_4, window_bounds = array<i64: 1, 32>}, {transform_indices = @transform_5, window_bounds = array<i64: 8, 32>}]} {
    %c0 = arith.constant 0 : index
    %c0_0 = arith.constant 0 : index
    %0 = vector.load %arg1[%c0, %c0_0] : memref<8x32xf32, #tpu.memory_space<vmem>>, vector<8x32xf32>
    %c0_1 = arith.constant 0 : index
    %c0_2 = arith.constant 0 : index
    %1 = vector.load %arg2[%c0_1, %c0_2] : memref<32x32xf32, #tpu.memory_space<vmem>>, vector<32x32xf32>
    %cst = arith.constant dense<0.000000e+00> : vector<8x32xf32>
    %2 = tpu.matmul %0, %1, %cst {dimension_numbers = #tpu.dot_dimension_numbers<[1], [0], [0], [1], [0, 0, 1, 1], [], []>} : vector<8x32xf32>, vector<32x32xf32>, vector<8x32xf32> -> vector<8x32xf32>
    %c0_3 = arith.constant 0 : index
    %c0_4 = arith.constant 0 : index
    %3 = vector.load %arg3[%c0_3, %c0_4] : memref<1x32xf32, #tpu.memory_space<vmem>>, vector<1x32xf32>
    %4 = vector.broadcast %3 : vector<1x32xf32> to vector<8x32xf32>
    %5 = arith.addf %2, %4 : vector<8x32xf32>
    %cst_5 = arith.constant 0.000000e+00 : f32
    %6 = vector.broadcast %cst_5 : f32 to vector<8x32xf32>
    %7 = arith.maximumf %5, %6 : vector<8x32xf32>
    %c0_6 = arith.constant 0 : index
    %c0_7 = arith.constant 0 : index
    %8 = vector.load %arg4[%c0_6, %c0_7] : memref<32x32xf32, #tpu.memory_space<vmem>>, vector<32x32xf32>
    %cst_8 = arith.constant dense<0.000000e+00> : vector<8x32xf32>
    %9 = tpu.matmul %7, %8, %cst_8 {dimension_numbers = #tpu.dot_dimension_numbers<[1], [0], [0], [1], [0, 0, 1, 1], [], []>} : vector<8x32xf32>, vector<32x32xf32>, vector<8x32xf32> -> vector<8x32xf32>
    %c0_9 = arith.constant 0 : index
    %c0_10 = arith.constant 0 : index
    %10 = vector.load %arg5[%c0_9, %c0_10] : memref<1x32xf32, #tpu.memory_space<vmem>>, vector<1x32xf32>
    %11 = vector.broadcast %10 : vector<1x32xf32> to vector<8x32xf32>
    %12 = arith.addf %9, %11 : vector<8x32xf32>
    %c0_11 = arith.constant 0 : index
    %c0_12 = arith.constant 0 : index
    %13 = vector.load %arg6[%c0_11, %c0_12] : memref<8x32xf32, #tpu.memory_space<vmem>>, vector<8x32xf32>
    tpu.vector_store %arg6[%c0_11, %c0_12], %12 {strides = array<i32>} : memref<8x32xf32, #tpu.memory_space<vmem>>, vector<8x32xf32>,
    return
  }
  func.func @transform_0(%arg0: i32) -> (i32, i32) {
    %c0_i32 = arith.constant 0 : i32
    %c0_i32_0 = arith.constant 0 : i32
    return %arg0, %c0_i32 : i32, i32
  }
  func.func @transform_1(%arg0: i32) -> (i32, i32) {
    %c0_i32 = arith.constant 0 : i32
    %c0_i32_0 = arith.constant 0 : i32
    %c0_i32_1 = arith.constant 0 : i32
    return %c0_i32, %c0_i32_0 : i32, i32
  }
  func.func @transform_2(%arg0: i32) -> (i32, i32) {
    %c0_i32 = arith.constant 0 : i32
    %c0_i32_0 = arith.constant 0 : i32
    %c0_i32_1 = arith.constant 0 : i32
    return %c0_i32, %c0_i32_0 : i32, i32
  }
  func.func @transform_3(%arg0: i32) -> (i32, i32) {
    %c0_i32 = arith.constant 0 : i32
    %c0_i32_0 = arith.constant 0 : i32
    %c0_i32_1 = arith.constant 0 : i32
    return %c0_i32, %c0_i32_0 : i32, i32
  }
  func.func @transform_4(%arg0: i32) -> (i32, i32) {
    %c0_i32 = arith.constant 0 : i32
    %c0_i32_0 = arith.constant 0 : i32
    %c0_i32_1 = arith.constant 0 : i32
    return %c0_i32, %c0_i32_0 : i32, i32
  }
  func.func @transform_5(%arg0: i32) -> (i32, i32) {
    %c0_i32 = arith.constant 0 : i32
    %c0_i32_0 = arith.constant 0 : i32
    return %arg0, %c0_i32 : i32, i32
  }
}

module attributes {stable_mosaic.version = 11 : i64} {
  func.func @_apply_node_func_kernel(%arg0: i32, %arg1: memref<8x32xf32, #tpu.memory_space<vmem>>, %arg2: memref<32x32xf32, #tpu.memory_space<vmem>>, %arg3: memref<1x32xf32, #tpu.memory_space<vmem>>, %arg4: memref<32x32xf32, #tpu.memory_space<vmem>>, %arg5: memref<1x32xf32, #tpu.memory_space<vmem>>, %arg6: memref<8x32xf32, #tpu.memory_space<vmem>>) attributes {dimension_semantics = [#tpu.dimension_semantics<parallel>], iteration_bounds = array<i64: 1>, scalar_prefetch = 0 : i64, scratch_operands = 0 : i64, tpu.core_type = #tpu.core_type<tc>, window_params = [{transform_indices = @transform_0, window_bounds = array<i64: 8, 32>}, {pipeline_mode = #tpu.pipeline_mode<synchronous>, transform_indices = @transform_1, window_bounds = array<i64: 32, 32>}, {pipeline_mode = #tpu.pipeline_mode<synchronous>, transform_indices = @transform_2, window_bounds = array<i64: 1, 32>}, {pipeline_mode = #tpu.pipeline_mode<synchronous>, transform_indices = @transform_3, window_bounds = array<i64: 32, 32>}, {pipeline_mode = #tpu.pipeline_mode<synchronous>, transform_indices = @transform_4, window_bounds = array<i64: 1, 32>}, {transform_indices = @transform_5, window_bounds = array<i64: 8, 32>}]} {
    %c0 = arith.constant 0 : index
    %c0_0 = arith.constant 0 : index
    %0 = vector.load %arg1[%c0, %c0_0] : memref<8x32xf32, #tpu.memory_space<vmem>>, vector<8x32xf32>
    %c0_1 = arith.constant 0 : index
    %c0_2 = arith.constant 0 : index
    %1 = vector.load %arg2[%c0_1, %c0_2] : memref<32x32xf32, #tpu.memory_space<vmem>>, vector<32x32xf32>
    %cst = arith.constant dense<0.000000e+00> : vector<8x32xf32>
    %2 = tpu.matmul %0, %1, %cst {dimension_numbers = #tpu.dot_dimension_numbers<[1], [0], [0], [1], [0, 0, 1, 1], [], []>} : vector<8x32xf32>, vector<32x32xf32>, vector<8x32xf32> -> vector<8x32xf32>
    %c0_3 = arith.constant 0 : index
    %c0_4 = arith.constant 0 : index
    %3 = vector.load %arg3[%c0_3, %c0_4] : memref<1x32xf32, #tpu.memory_space<vmem>>, vector<1x32xf32>
    %4 = vector.broadcast %3 : vector<1x32xf32> to vector<8x32xf32>
    %5 = arith.addf %2, %4 : vector<8x32xf32>
    %cst_5 = arith.constant 0.000000e+00 : f32
    %6 = vector.broadcast %cst_5 : f32 to vector<8x32xf32>
    %7 = arith.maximumf %5, %6 : vector<8x32xf32>
    %c0_6 = arith.constant 0 : index
    %c0_7 = arith.constant 0 : index
    %8 = vector.load %arg4[%c0_6, %c0_7] : memref<32x32xf32, #tpu.memory_space<vmem>>, vector<32x32xf32>
    %cst_8 = arith.constant dense<0.000000e+00> : vector<8x32xf32>
    %9 = tpu.matmul %7, %8, %cst_8 {dimension_numbers = #tpu.dot_dimension_numbers<[1], [0], [0], [1], [0, 0, 1, 1], [], []>} : vector<8x32xf32>, vector<32x32xf32>, vector<8x32xf32> -> vector<8x32xf32>
    %c0_9 = arith.constant 0 : index
    %c0_10 = arith.constant 0 : index
    %10 = vector.load %arg5[%c0_9, %c0_10] : memref<1x32xf32, #tpu.memory_space<vmem>>, vector<1x32xf32>
    %11 = vector.broadcast %10 : vector<1x32xf32> to vector<8x32xf32>
    %12 = arith.addf %9, %11 : vector<8x32xf32>
    %c0_11 = arith.constant 0 : index
    %c0_12 = arith.constant 0 : index
    %13 = vector.load %arg6[%c0_11, %c0_12] : memref<8x32xf32, #tpu.memory_space<vmem>>, vector<8x32xf32>
    tpu.vector_store %arg6[%c0_11, %c0_12], %12 {strides = array<i32>} : memref<8x32xf32, #tpu.memory_space<vmem>>, vector<8x32xf32>,
    return
  }
  func.func @transform_0(%arg0: i32) -> (i32, i32) {
    %c0_i32 = arith.constant 0 : i32
    %c0_i32_0 = arith.constant 0 : i32
    return %arg0, %c0_i32 : i32, i32
  }
  func.func @transform_1(%arg0: i32) -> (i32, i32) {
    %c0_i32 = arith.constant 0 : i32
    %c0_i32_0 = arith.constant 0 : i32
    %c0_i32_1 = arith.constant 0 : i32
    return %c0_i32, %c0_i32_0 : i32, i32
  }
  func.func @transform_2(%arg0: i32) -> (i32, i32) {
    %c0_i32 = arith.constant 0 : i32
    %c0_i32_0 = arith.constant 0 : i32
    %c0_i32_1 = arith.constant 0 : i32
    return %c0_i32, %c0_i32_0 : i32, i32
  }
  func.func @transform_3(%arg0: i32) -> (i32, i32) {
    %c0_i32 = arith.constant 0 : i32
    %c0_i32_0 = arith.constant 0 : i32
    %c0_i32_1 = arith.constant 0 : i32
    return %c0_i32, %c0_i32_0 : i32, i32
  }
  func.func @transform_4(%arg0: i32) -> (i32, i32) {
    %c0_i32 = arith.constant 0 : i32
    %c0_i32_0 = arith.constant 0 : i32
    %c0_i32_1 = arith.constant 0 : i32
    return %c0_i32, %c0_i32_0 : i32, i32
  }
  func.func @transform_5(%arg0: i32) -> (i32, i32) {
    %c0_i32 = arith.constant 0 : i32
    %c0_i32_0 = arith.constant 0 : i32
    return %arg0, %c0_i32 : i32, i32
  }
}

</mosaic_0001>

<bundles_post_ra>
// kernel: tpu_custom_call.1
= control target key start
LH: loop header
LB: loop body
LE: loop exit
PB: predicated region body
PF: predicated region fallthrough
CT: control target
= control target key end

     0   :  { %10 = vsyncpa [#allocation3], 0  ;;  %s501_s0 = inlined_call_operand.hbm [shape: f32[8,32], index: 0, kind: input, shape index: {}]   ;;  %s502_s1 = inlined_call_operand.hbm [shape: f32[32,32], index: 1, kind: input, shape index: {}]   ;;  %s503_s2 = inlined_call_operand.vmem [shape: f32[1,32], index: 2, kind: input, shape index: {}]   ;;  %s504_s3 = inlined_call_operand.hbm [shape: f32[32,32], index: 3, kind: input, shape index: {}]   ;;  %s505_s4 = inlined_call_operand.vmem [shape: f32[1,32], index: 4, kind: input, shape index: {}]   ;;  %s506_s5 = inlined_call_operand.hbm [shape: f32[8,32], index: 5, kind: output, shape index: {}]  }
   0x1   :  { %11 = vsyncpa [#allocation6], 0 }
   0x2   :  { %12 = vsyncpa [#allocation4], 0  ;;  %s399_s18 = smov [#allocation5]   ;;  %s305_s22 = scalar_lea.hbm %s502_s1, 512 }
   0x3   :  { %s28_s19 = sshll.u32 %s399_s18, 4  ;;  %p306_p0 = scmp.ne.s32.totalorder %s502_s1, %s305_s22  ;;  %s29_s19 = int_to_ptr.vmem [resolvable:$true] %s28_s19 }
   0x4   :  { %p309_p1 = scmp.lt.u32.totalorder %s305_s22, %s502_s1 }
   0x6   :  { %p311_p2 = pnand %p309_p1, %p306_p0 }
   0x8   :  { %314 = shalt.err (!%p311_p2)
}
   0x9   :  { %s315_s27 = scalar_lea.vmem %s29_s19, 512  ;;  %p320_p4 = scmp.lt.s32.totalorder %s29_s19, %s29_s19 }
   0xa   :  { %p316_p3 = scmp.ne.s32.totalorder %s29_s19, %s315_s27  ;;  %p321_p5 = scmp.lt.s32.totalorder %s315_s27, %s315_s27 }
   0xc   :  { %p322_p6 = por %p321_p5, %p320_p4 }
   0xe   :  { %p323_p7 = pnand %p322_p6, %p316_p3 }
  0x10   :  { %326 = shalt.err (!%p323_p7)
}
  0x11   :  { %s400_s28 = smov 128   ;;  %s401_s29 = smov 8  }
  0x12   :  { %34 = dma.hbm_to_vmem [thread:$0]  %s502_s1, 512, %s29_s19, [#allocation6], %s400_s28, %s400_s28, %s401_s29  }
  0x13   :  { %s402_s7 = smov [#allocation2]   ;;  %s403_s9 = smov [#allocation7]  }
  0x14   :  { %s19_s8 = sshll.u32 %s402_s7, 4  ;;  %s42_s10 = sshll.u32 %s403_s9, 4  ;;  %s20_s8 = int_to_ptr.vmem [resolvable:$true] %s19_s8  ;;  %s43_s10 = int_to_ptr.vmem [resolvable:$true] %s42_s10 }
  0x15   :  { %s327_s13 = scalar_lea.hbm %s501_s0, 128 }
  0x16   :  { %p328_p8 = scmp.ne.s32.totalorder %s501_s0, %s327_s13  ;;  %p331_p9 = scmp.lt.u32.totalorder %s327_s13, %s501_s0 }
  0x18   :  { %p333_p10 = pnand %p331_p9, %p328_p8 }
  0x1a   :  { %336 = shalt.err (!%p333_p10)
}
  0x1b   :  { %s337_s1 = scalar_lea.vmem %s20_s8, 128  ;;  %p342_p12 = scmp.lt.s32.totalorder %s20_s8, %s20_s8 }
  0x1c   :  { %p338_p11 = scmp.ne.s32.totalorder %s20_s8, %s337_s1  ;;  %p343_p13 = scmp.lt.s32.totalorder %s337_s1, %s337_s1 }
  0x1e   :  { %p344_p0 = por %p343_p13, %p342_p12 }
  0x20   :  { %p345_p1 = pnand %p344_p0, %p338_p11 }
  0x22   :  { %348 = shalt.err (!%p345_p1)
}
  0x23   :  { %22 = dma.hbm_to_vmem [thread:$0]  %s501_s0, 128, %s20_s8, [#allocation3]  }
  0x24   :  { %s349_s22 = scalar_lea.hbm %s504_s3, 512 }
  0x25   :  { %p350_p2 = scmp.ne.s32.totalorder %s504_s3, %s349_s22  ;;  %p353_p3 = scmp.lt.u32.totalorder %s349_s22, %s504_s3 }
  0x27   :  { %p355_p4 = pnand %p353_p3, %p350_p2 }
  0x29   :  { %358 = shalt.err (!%p355_p4)
}
  0x2a   :  { %s359_s27 = scalar_lea.vmem %s43_s10, 512  ;;  %p364_p6 = scmp.lt.s32.totalorder %s43_s10, %s43_s10 }
  0x2b   :  { %p360_p5 = scmp.ne.s32.totalorder %s43_s10, %s359_s27  ;;  %p365_p7 = scmp.lt.s32.totalorder %s359_s27, %s359_s27 }
  0x2d   :  { %p366_p8 = por %p365_p7, %p364_p6 }
  0x2f   :  { %p367_p9 = pnand %p366_p8, %p360_p5 }
  0x31   :  { %370 = shalt.err (!%p367_p9)
}
  0x32   :  { %48 = dma.hbm_to_vmem [thread:$0]  %s504_s3, 512, %s43_s10, [#allocation6], %s400_s28, %s400_s28, %s401_s29  }
  0x33   :  { %393 = dma.done.wait [#allocation3], 128  }
  0x34   :  { %394 = vsyncadd [#allocation3], 4294967168 }
  0x35   :  { %395 = dma.done.wait [#allocation6], 1024  }
  0x36   :  { %396 = vsyncadd [#allocation6], 4294966272  ;;  %v404_v0 = vmov 0.0|0.0   ;;  %vm405_vm0 = vmmov 0   ;;  %v406_v1 = vmov 0.0   ;;  %v61_v2 = vld [vmem:[#allocation5] sm:$0xff] }
  0x37   :  { %284 = vmatprep.subr.bf16.mxu0 %v404_v0  ;;  %270 = vmatprep.mubr.msk.f32.mxu0 %vm405_vm0, %v406_v1  ;;  %v62_v3 = vld [vmem:[#allocation5 + $0x8] sm:$0xff]  ;;  %v63_v4 = vld [vmem:[#allocation5 + $0x10] sm:$0xff]  ;;  %v64_v6 = vld [vmem:[#allocation5 + $0x18] sm:$0xff]  ;;  %vm72_vm1 = vcmask 261120   ;;  %s407_s7 = smov [#allocation8]  }
  0x38   :  { %290 = vmatprep.subr.bf16.mxu1 %v404_v0  ;;  %281 = vmatprep.mubr.msk.f32.mxu1 %vm405_vm0, %v406_v1  ;;  %v285_v5 = vpack.c.bf16 %v62_v3, %v61_v2  ;;  %v147_v7 = vld [vmem:[#allocation7] sm:$0xff]  ;;  %v148_v8 = vld [vmem:[#allocation7 + $0x8] sm:$0xff]  ;;  %v288_v9 = vpack.c.bf16 %v64_v6, %v63_v4  ;;  %v60_v11 = vld [vmem:[#allocation2] sm:$0xff]  ;;  %s238_s8 = sshll.u32 %s407_s7, 4  ;;  %s239_s8 = int_to_ptr.vmem [resolvable:$true] %s238_s8 }
  0x39   :  { %v291_v10 = vpack.c.bf16 %v148_v8, %v147_v7  ;;  %v149_v12 = vld [vmem:[#allocation7 + $0x10] sm:$0xff]  ;;  %v150_v13 = vld [vmem:[#allocation7 + $0x18] sm:$0xff]  ;;  %s371_s9 = scalar_lea.vmem %s239_s8, 128  ;;  %p376_p11 = scmp.lt.s32.totalorder %s239_s8, %s239_s8 }
  0x3a   :  { %286 = vmatpush3.bf16.msra.mxu0 %v285_v5  ;;  %v294_v14 = vpack.c.bf16 %v150_v13, %v149_v12  ;;  %v248_v15 = vld [vmem:[%s503_s2] ss:$0 sm:$0xff]  ;;  %p372_p10 = scmp.ne.s32.totalorder %s239_s8, %s371_s9  ;;  %p377_p12 = scmp.lt.s32.totalorder %s371_s9, %s371_s9 }
  0x3b   :  { %287 = vmatprep.subr.bf16.mxu0 %v404_v0  ;;  %292 = vmatpush3.bf16.msra.mxu1 %v291_v10  ;;  %v250_v20 = vld [vmem:[%s505_s4] ss:$0 sm:$0xff] }
  0x3c   :  { %293 = vmatprep.subr.bf16.mxu1 %v404_v0  ;;  %p378_p13 = por %p377_p12, %p376_p11 }
  0x3e   :  { %289 = vmatpush3.bf16.msra.mxu0 %v288_v9  ;;  %p379_p0 = pnand %p378_p13, %p372_p10 }
  0x3f   :  { %295 = vmatpush3.bf16.msra.mxu1 %v294_v14 }
  0x41   :  { %271 = vmatmul.mubr.msk.f32.vlgmr.msra.gmra.mrb[0].mxu0 %vm72_vm1, %v60_v11 }
 0x114   :  { %v142_v16 = vpop.f32.mrb[0].mxu0 }
 0x115   :  { %v143_v17 = vadd.f32 %v248_v15, %v142_v16  ;;  %v272_v18 = vpop.f32.mrb[1].mxu0 }
 0x117   :  { %v146_v19 = vmax.f32 %v143_v17, 0.0 }
 0x119   :  { %282 = vmatmul.mubr.msk.f32.vlgmr.msra.gmra.mrb[0].mxu1 %vm72_vm1, %v146_v19 }
 0x1ec   :  { %v227_v21 = vpop.f32.mrb[0].mxu1 }
 0x1ed   :  { %v228_v22 = vadd.f32 %v250_v20, %v227_v21  ;;  %v283_v23 = vpop.f32.mrb[1].mxu1 }
 0x1ef   :  { %231 = vst.msk [vmem:[#allocation8] sm:$0xff] %vm72_vm1, %v228_v22 }
 0x1f0   :  { %382 = shalt.err (!%p379_p0)
}
 0x1f1   :  { %s383_s11 = scalar_lea.hbm %s506_s5, 128 }
 0x1f2   :  { %p384_p1 = scmp.ne.s32.totalorder %s506_s5, %s383_s11  ;;  %p387_p2 = scmp.lt.u32.totalorder %s383_s11, %s506_s5 }
 0x1f4   :  { %p389_p3 = pnand %p387_p2, %p384_p1 }
 0x1f6   :  { %392 = shalt.err (!%p389_p3)
}
 0x1f7   :  { %241 = dma.vmem_to_hbm [thread:$0]  %s239_s8, 128, %s506_s5, [#allocation4]  }
 0x1f8   :  { %397 = dma.done.wait [#allocation4], 128  }
 0x1f9   :  { %398 = vsyncadd [#allocation4], 4294967168 }
 0x1fa   :  { %245 = vsyncpa [#allocation3], 1 }
 0x1fb   :  { %246 = vsyncpa [#allocation6], 1 }
 0x1fc   :  { %247 = vsyncpa [#allocation4], 1 }

// kernel: tpu_custom_call.1
= control target key start
LH: loop header
LB: loop body
LE: loop exit
PB: predicated region body
PF: predicated region fallthrough
CT: control target
= control target key end

     0   :  { %10 = vsyncpa [#allocation3], 0  ;;  %s501_s0 = inlined_call_operand.hbm [shape: f32[8,32], index: 0, kind: input, shape index: {}]   ;;  %s502_s1 = inlined_call_operand.hbm [shape: f32[32,32], index: 1, kind: input, shape index: {}]   ;;  %s503_s2 = inlined_call_operand.vmem [shape: f32[1,32], index: 2, kind: input, shape index: {}]   ;;  %s504_s3 = inlined_call_operand.hbm [shape: f32[32,32], index: 3, kind: input, shape index: {}]   ;;  %s505_s4 = inlined_call_operand.vmem [shape: f32[1,32], index: 4, kind: input, shape index: {}]   ;;  %s506_s5 = inlined_call_operand.hbm [shape: f32[8,32], index: 5, kind: output, shape index: {}]  }
   0x1   :  { %11 = vsyncpa [#allocation6], 0 }
   0x2   :  { %12 = vsyncpa [#allocation4], 0  ;;  %s399_s18 = smov [#allocation5]   ;;  %s305_s22 = scalar_lea.hbm %s502_s1, 512 }
   0x3   :  { %s28_s19 = sshll.u32 %s399_s18, 4  ;;  %p306_p0 = scmp.ne.s32.totalorder %s502_s1, %s305_s22  ;;  %s29_s19 = int_to_ptr.vmem [resolvable:$true] %s28_s19 }
   0x4   :  { %p309_p1 = scmp.lt.u32.totalorder %s305_s22, %s502_s1 }
   0x6   :  { %p311_p2 = pnand %p309_p1, %p306_p0 }
   0x8   :  { %314 = shalt.err (!%p311_p2)
}
   0x9   :  { %s315_s27 = scalar_lea.vmem %s29_s19, 512  ;;  %p320_p4 = scmp.lt.s32.totalorder %s29_s19, %s29_s19 }
   0xa   :  { %p316_p3 = scmp.ne.s32.totalorder %s29_s19, %s315_s27  ;;  %p321_p5 = scmp.lt.s32.totalorder %s315_s27, %s315_s27 }
   0xc   :  { %p322_p6 = por %p321_p5, %p320_p4 }
   0xe   :  { %p323_p7 = pnand %p322_p6, %p316_p3 }
  0x10   :  { %326 = shalt.err (!%p323_p7)
}
  0x11   :  { %s400_s28 = smov 128   ;;  %s401_s29 = smov 8  }
  0x12   :  { %34 = dma.hbm_to_vmem [thread:$0]  %s502_s1, 512, %s29_s19, [#allocation6], %s400_s28, %s400_s28, %s401_s29  }
  0x13   :  { %s402_s7 = smov [#allocation2]   ;;  %s403_s9 = smov [#allocation7]  }
  0x14   :  { %s19_s8 = sshll.u32 %s402_s7, 4  ;;  %s42_s10 = sshll.u32 %s403_s9, 4  ;;  %s20_s8 = int_to_ptr.vmem [resolvable:$true] %s19_s8  ;;  %s43_s10 = int_to_ptr.vmem [resolvable:$true] %s42_s10 }
  0x15   :  { %s327_s13 = scalar_lea.hbm %s501_s0, 128 }
  0x16   :  { %p328_p8 = scmp.ne.s32.totalorder %s501_s0, %s327_s13  ;;  %p331_p9 = scmp.lt.u32.totalorder %s327_s13, %s501_s0 }
  0x18   :  { %p333_p10 = pnand %p331_p9, %p328_p8 }
  0x1a   :  { %336 = shalt.err (!%p333_p10)
}
  0x1b   :  { %s337_s1 = scalar_lea.vmem %s20_s8, 128  ;;  %p342_p12 = scmp.lt.s32.totalorder %s20_s8, %s20_s8 }
  0x1c   :  { %p338_p11 = scmp.ne.s32.totalorder %s20_s8, %s337_s1  ;;  %p343_p13 = scmp.lt.s32.totalorder %s337_s1, %s337_s1 }
  0x1e   :  { %p344_p0 = por %p343_p13, %p342_p12 }
  0x20   :  { %p345_p1 = pnand %p344_p0, %p338_p11 }
  0x22   :  { %348 = shalt.err (!%p345_p1)
}
  0x23   :  { %22 = dma.hbm_to_vmem [thread:$0]  %s501_s0, 128, %s20_s8, [#allocation3]  }
  0x24   :  { %s349_s22 = scalar_lea.hbm %s504_s3, 512 }
  0x25   :  { %p350_p2 = scmp.ne.s32.totalorder %s504_s3, %s349_s22  ;;  %p353_p3 = scmp.lt.u32.totalorder %s349_s22, %s504_s3 }
  0x27   :  { %p355_p4 = pnand %p353_p3, %p350_p2 }
  0x29   :  { %358 = shalt.err (!%p355_p4)
}
  0x2a   :  { %s359_s27 = scalar_lea.vmem %s43_s10, 512  ;;  %p364_p6 = scmp.lt.s32.totalorder %s43_s10, %s43_s10 }
  0x2b   :  { %p360_p5 = scmp.ne.s32.totalorder %s43_s10, %s359_s27  ;;  %p365_p7 = scmp.lt.s32.totalorder %s359_s27, %s359_s27 }
  0x2d   :  { %p366_p8 = por %p365_p7, %p364_p6 }
  0x2f   :  { %p367_p9 = pnand %p366_p8, %p360_p5 }
  0x31   :  { %370 = shalt.err (!%p367_p9)
}
  0x32   :  { %48 = dma.hbm_to_vmem [thread:$0]  %s504_s3, 512, %s43_s10, [#allocation6], %s400_s28, %s400_s28, %s401_s29  }
  0x33   :  { %393 = dma.done.wait [#allocation3], 128  }
  0x34   :  { %394 = vsyncadd [#allocation3], 4294967168 }
  0x35   :  { %395 = dma.done.wait [#allocation6], 1024  }
  0x36   :  { %396 = vsyncadd [#allocation6], 4294966272  ;;  %v404_v0 = vmov 0.0|0.0   ;;  %vm405_vm0 = vmmov 0   ;;  %v406_v1 = vmov 0.0   ;;  %v61_v2 = vld [vmem:[#allocation5] sm:$0xff] }
  0x37   :  { %284 = vmatprep.subr.bf16.mxu0 %v404_v0  ;;  %270 = vmatprep.mubr.msk.f32.mxu0 %vm405_vm0, %v406_v1  ;;  %v62_v3 = vld [vmem:[#allocation5 + $0x8] sm:$0xff]  ;;  %v63_v4 = vld [vmem:[#allocation5 + $0x10] sm:$0xff]  ;;  %v64_v6 = vld [vmem:[#allocation5 + $0x18] sm:$0xff]  ;;  %vm72_vm1 = vcmask 261120   ;;  %s407_s7 = smov [#allocation8]  }
  0x38   :  { %290 = vmatprep.subr.bf16.mxu1 %v404_v0  ;;  %281 = vmatprep.mubr.msk.f32.mxu1 %vm405_vm0, %v406_v1  ;;  %v285_v5 = vpack.c.bf16 %v62_v3, %v61_v2  ;;  %v147_v7 = vld [vmem:[#allocation7] sm:$0xff]  ;;  %v148_v8 = vld [vmem:[#allocation7 + $0x8] sm:$0xff]  ;;  %v288_v9 = vpack.c.bf16 %v64_v6, %v63_v4  ;;  %v60_v11 = vld [vmem:[#allocation2] sm:$0xff]  ;;  %s238_s8 = sshll.u32 %s407_s7, 4  ;;  %s239_s8 = int_to_ptr.vmem [resolvable:$true] %s238_s8 }
  0x39   :  { %v291_v10 = vpack.c.bf16 %v148_v8, %v147_v7  ;;  %v149_v12 = vld [vmem:[#allocation7 + $0x10] sm:$0xff]  ;;  %v150_v13 = vld [vmem:[#allocation7 + $0x18] sm:$0xff]  ;;  %s371_s9 = scalar_lea.vmem %s239_s8, 128  ;;  %p376_p11 = scmp.lt.s32.totalorder %s239_s8, %s239_s8 }
  0x3a   :  { %286 = vmatpush3.bf16.msra.mxu0 %v285_v5  ;;  %v294_v14 = vpack.c.bf16 %v150_v13, %v149_v12  ;;  %v248_v15 = vld [vmem:[%s503_s2] ss:$0 sm:$0xff]  ;;  %p372_p10 = scmp.ne.s32.totalorder %s239_s8, %s371_s9  ;;  %p377_p12 = scmp.lt.s32.totalorder %s371_s9, %s371_s9 }
  0x3b   :  { %287 = vmatprep.subr.bf16.mxu0 %v404_v0  ;;  %292 = vmatpush3.bf16.msra.mxu1 %v291_v10  ;;  %v250_v20 = vld [vmem:[%s505_s4] ss:$0 sm:$0xff] }
  0x3c   :  { %293 = vmatprep.subr.bf16.mxu1 %v404_v0  ;;  %p378_p13 = por %p377_p12, %p376_p11 }
  0x3e   :  { %289 = vmatpush3.bf16.msra.mxu0 %v288_v9  ;;  %p379_p0 = pnand %p378_p13, %p372_p10 }
  0x3f   :  { %295 = vmatpush3.bf16.msra.mxu1 %v294_v14 }
  0x41   :  { %271 = vmatmul.mubr.msk.f32.vlgmr.msra.gmra.mrb[0].mxu0 %vm72_vm1, %v60_v11 }
 0x114   :  { %v142_v16 = vpop.f32.mrb[0].mxu0 }
 0x115   :  { %v143_v17 = vadd.f32 %v248_v15, %v142_v16  ;;  %v272_v18 = vpop.f32.mrb[1].mxu0 }
 0x117   :  { %v146_v19 = vmax.f32 %v143_v17, 0.0 }
 0x119   :  { %282 = vmatmul.mubr.msk.f32.vlgmr.msra.gmra.mrb[0].mxu1 %vm72_vm1, %v146_v19 }
 0x1ec   :  { %v227_v21 = vpop.f32.mrb[0].mxu1 }
 0x1ed   :  { %v228_v22 = vadd.f32 %v250_v20, %v227_v21  ;;  %v283_v23 = vpop.f32.mrb[1].mxu1 }
 0x1ef   :  { %231 = vst.msk [vmem:[#allocation8] sm:$0xff] %vm72_vm1, %v228_v22 }
 0x1f0   :  { %382 = shalt.err (!%p379_p0)
}
 0x1f1   :  { %s383_s11 = scalar_lea.hbm %s506_s5, 128 }
 0x1f2   :  { %p384_p1 = scmp.ne.s32.totalorder %s506_s5, %s383_s11  ;;  %p387_p2 = scmp.lt.u32.totalorder %s383_s11, %s506_s5 }
 0x1f4   :  { %p389_p3 = pnand %p387_p2, %p384_p1 }
 0x1f6   :  { %392 = shalt.err (!%p389_p3)
}
 0x1f7   :  { %241 = dma.vmem_to_hbm [thread:$0]  %s239_s8, 128, %s506_s5, [#allocation4]  }
 0x1f8   :  { %397 = dma.done.wait [#allocation4], 128  }
 0x1f9   :  { %398 = vsyncadd [#allocation4], 4294967168 }
 0x1fa   :  { %245 = vsyncpa [#allocation3], 1 }
 0x1fb   :  { %246 = vsyncpa [#allocation6], 1 }
 0x1fc   :  { %247 = vsyncpa [#allocation4], 1 }

</bundles_post_ra>
